<compile_context>
chip_gen: v7x
topology: tpu7x:2x2x1
jax: 0.10.0
libtpu: 0.0.40
codegen_flags: <defaults>
</compile_context>

<pallas_src>
import functools

import jax
import jax.numpy as jnp
from jax import lax
from jax.experimental import pallas as pl
from jax.experimental.pallas import tpu as pltpu


def _pick_row_tile(batch: int) -> int:
    """Largest nice row tile that divides the batch (falls back to the full batch)."""
    for tm in (512, 256, 128, 64, 32, 16, 8):
        if batch % tm == 0:
            return tm
    return batch


def _loss_kernel(*refs, tau, alpha, loss_mode, mxu_bf16):
    want_infonce = loss_mode != 'sim'       # 'infonce' or 'both'/other -> CE term
    want_aug = loss_mode != 'infonce'       # 'sim' or 'both'/other   -> aug term

    if want_infonce:
        anchor_ref, pos_full_ref, pos_tile_ref, refs_ref, out_ref = refs
    else:
        anchor_ref, pos_tile_ref, refs_ref, out_ref = refs

    a = anchor_ref[...].astype(jnp.float32)        # (TM, D)
    pt = pos_tile_ref[...].astype(jnp.float32)     # (TM, D), rows aligned with anchor tile

    inv_tau = jnp.float32(1.0 / tau)
    # F.normalize: x / max(||x||, eps) with eps=1e-12.  rsqrt form clamps the
    # squared norm with eps^2 (1e-24, still a normal f32) -> identical result.
    eps_sq = jnp.float32(1e-24)

    a_n = a * lax.rsqrt(jnp.maximum(jnp.sum(a * a, axis=-1, keepdims=True), eps_sq))
    pt_n = pt * lax.rsqrt(jnp.maximum(jnp.sum(pt * pt, axis=-1, keepdims=True), eps_sq))

    # Diagonal of the un-scaled similarity matrix for this tile's rows.
    sim_pos = jnp.sum(a_n * pt_n, axis=-1, keepdims=True)        # (TM, 1)

    tm = a.shape[0]
    per_row = jnp.zeros((tm, 1), jnp.float32)

    if want_infonce:
        p = pos_full_ref[...].astype(jnp.float32)                # (B, D)
        p_n = p * lax.rsqrt(jnp.maximum(jnp.sum(p * p, axis=-1, keepdims=True), eps_sq))

        # Fold 1/tau into the smaller (TM, D) operand instead of scaling (TM, B).
        a_s = a_n * inv_tau
        if mxu_bf16:
            lhs = a_s.astype(jnp.bfloat16)
            rhs = p_n.astype(jnp.bfloat16)
        else:
            lhs = a_s
            rhs = p_n

        # Contract on the last dims of both operands -> no explicit p_n.T.
        sim = lax.dot_general(
            lhs, rhs,
            dimension_numbers=(((1,), (1,)), ((), ())),
            preferred_element_type=jnp.float32)                  # (TM, B)

        m = jnp.max(sim, axis=-1, keepdims=True)
        lse = m + jnp.log(jnp.sum(jnp.exp(sim - m), axis=-1, keepdims=True))
        diag_logits = sim_pos * inv_tau
        per_row = per_row + jnp.float32(alpha) * (lse - diag_logits)

    if want_aug:
        r = refs_ref[...].astype(jnp.float32)                    # (TM, 1)
        per_row = per_row + jnp.float32(1.0 - alpha) * (sim_pos - r) ** 2

    tile_partial = jnp.sum(per_row)                              # scalar partial sum
    # Lane-dense (1, 8, 128) store -- avoids masked 1-lane vst; wrapper reads [.,0,0].
    out_ref[...] = jnp.full(out_ref.shape, tile_partial, jnp.float32)


def controlled_music_embedding_loss(anchor, positives, refs,
                                    tau=0.1, alpha=0.5, loss_mode='infonce',
                                    mxu_bf16=False):
    """JAX/Pallas equivalent of ControlledMusicEmbeddingLoss.forward.

    anchor:    (B, D) float
    positives: (B, D) float
    refs:      (B,)   float
    returns:   scalar float32 loss
    """
    B, D = anchor.shape
    refs2d = refs.reshape(B, 1).astype(jnp.float32)

    want_infonce = loss_mode != 'sim'

    TM = _pick_row_tile(B)
    n_tiles = B // TM

    kernel = functools.partial(_loss_kernel, tau=float(tau), alpha=float(alpha),
                               loss_mode=loss_mode, mxu_bf16=bool(mxu_bf16))

    anchor_spec = pl.BlockSpec((TM, D), lambda i: (i, 0))
    pos_full_spec = pl.BlockSpec((B, D), lambda i: (0, 0))   # constant block -> resident
    pos_tile_spec = pl.BlockSpec((TM, D), lambda i: (i, 0))
    refs_spec = pl.BlockSpec((TM, 1), lambda i: (i, 0))

    if want_infonce:
        in_specs = [anchor_spec, pos_full_spec, pos_tile_spec, refs_spec]
        inputs = (anchor, positives, positives, refs2d)
    else:
        # 'sim' mode: no matmul, so do not even DMA the full positives block.
        in_specs = [anchor_spec, pos_tile_spec, refs_spec]
        inputs = (anchor, positives, refs2d)

    # Rough VMEM budget (f32, double-buffered tiled inputs + resident p_n +
    # the (TM, B) sim intermediate).  Keeps headroom explicit so the same
    # kernel does not silently flip into a spill regime on v7x (64 MiB).
    f32b = 4
    resident_bytes = (B * D * f32b) if want_infonce else 0
    per_buf_bytes = (2 * TM * D + TM) * f32b
    sim_bytes = (TM * B * f32b) if want_infonce else 0
    est = 2 * resident_bytes + 2 * per_buf_bytes + 3 * sim_bytes \
        + 2 * (8 * 128 * f32b) + (2 << 20)
    vmem_limit = int(min(max(est, 32 << 20), 100 << 20))

    out = pl.pallas_call(
        kernel,
        out_shape=jax.ShapeDtypeStruct((n_tiles, 8, 128), jnp.float32),
        grid_spec=pltpu.PrefetchScalarGridSpec(
            num_scalar_prefetch=0,
            grid=(n_tiles,),
            in_specs=in_specs,
            out_specs=pl.BlockSpec((1, 8, 128), lambda i: (i, 0, 0)),
        ),
        compiler_params=pltpu.CompilerParams(
            dimension_semantics=("parallel",),   # row tiles are independent (v7x megacore)
            vmem_limit_bytes=vmem_limit,
        ),
    )(*inputs)

    # Tiny final reduction over per-tile partial sums (kept in plain JAX so the
    # grid axis can stay "parallel").
    return jnp.sum(out[:, 0, 0]) / jnp.float32(B)


def _reference_loss(anchor, positives, refs, tau=0.1, alpha=0.5,
                    loss_mode='infonce'):
    """Pure-JAX reference for correctness checking (mirrors the PyTorch module)."""
    eps = 1e-12
    a_n = anchor / jnp.maximum(jnp.linalg.norm(anchor, axis=-1, keepdims=True), eps)
    p_n = positives / jnp.maximum(jnp.linalg.norm(positives, axis=-1, keepdims=True), eps)
    sim = (a_n @ p_n.T) / tau
    lse = jax.scipy.special.logsumexp(sim, axis=-1)
    diag = jnp.diag(sim)
    loss_infonce = jnp.mean(lse - diag)
    sim_pos = jnp.sum(a_n * p_n, axis=-1)
    loss_aug = jnp.mean((sim_pos - refs) ** 2)
    if loss_mode == 'infonce':
        return alpha * loss_infonce
    elif loss_mode == 'sim':
        return (1 - alpha) * loss_aug
    return (1 - alpha) * loss_aug + alpha * loss_infonce


if __name__ == "__main__":
    # NOTE: at these tiny shapes the pallas_call is pure launch overhead and a
    # plain jitted-JAX expression would be faster; the kernel targets large B, D.
    key = jax.random.PRNGKey(0)
    k1, k2, k3 = jax.random.split(key, 3)

    B, D = 8, 32
    anchor = jax.random.normal(k1, (B, D), dtype=jnp.float32)
    positives = jax.random.normal(k2, (B, D), dtype=jnp.float32)
    refs = jax.random.uniform(k3, (B,), dtype=jnp.float32)

    # f32 MXU path: tight tolerance against the reference.
    for mode in ('infonce', 'sim', 'both'):
        loss = controlled_music_embedding_loss(
            anchor, positives, refs, tau=0.1, alpha=0.5, loss_mode=mode)
        loss = jax.block_until_ready(loss)
        ref = _reference_loss(anchor, positives, refs, tau=0.1, alpha=0.5,
                              loss_mode=mode)
        assert jnp.allclose(loss, ref, rtol=1e-5, atol=1e-5), (mode, loss, ref)

    # bf16 MXU operands (f32 accumulation): full-rate MXU path, looser tolerance.
    loss_bf16 = controlled_music_embedding_loss(
        anchor, positives, refs, tau=0.1, alpha=0.5, loss_mode='both',
        mxu_bf16=True)
    loss_bf16 = jax.block_until_ready(loss_bf16)
    ref_both = _reference_loss(anchor, positives, refs, tau=0.1, alpha=0.5,
                               loss_mode='both')
    assert jnp.allclose(loss_bf16, ref_both, rtol=3e-2, atol=3e-2), (loss_bf16, ref_both)

    print("KERNEL_OK")
</pallas_src>

<mosaic_0001>
module attributes {stable_mosaic.version = 11 : i64} {
  func.func @_loss_kernel(%arg0: i32, %arg1: memref<8x32xf32, #tpu.memory_space<vmem>>, %arg2: memref<8x32xf32, #tpu.memory_space<vmem>>, %arg3: memref<8x32xf32, #tpu.memory_space<vmem>>, %arg4: memref<8x1xf32, #tpu.memory_space<vmem>>, %arg5: memref<1x8x128xf32, #tpu.memory_space<vmem>>) attributes {dimension_semantics = [#tpu.dimension_semantics<parallel>], iteration_bounds = array<i64: 1>, scalar_prefetch = 0 : i64, scratch_operands = 0 : i64, tpu.core_type = #tpu.core_type<tc>, window_params = [{transform_indices = @transform_0, window_bounds = array<i64: 8, 32>}, {pipeline_mode = #tpu.pipeline_mode<synchronous>, transform_indices = @transform_1, window_bounds = array<i64: 8, 32>}, {transform_indices = @transform_2, window_bounds = array<i64: 8, 32>}, {transform_indices = @transform_3, window_bounds = array<i64: 8, 1>}, {transform_indices = @transform_4, window_bounds = array<i64: 1, 8, 128>}]} {
    %c0 = arith.constant 0 : index
    %c0_0 = arith.constant 0 : index
    %0 = vector.load %arg1[%c0, %c0_0] : memref<8x32xf32, #tpu.memory_space<vmem>>, vector<8x32xf32>
    %c0_1 = arith.constant 0 : index
    %c0_2 = arith.constant 0 : index
    %1 = vector.load %arg3[%c0_1, %c0_2] : memref<8x32xf32, #tpu.memory_space<vmem>>, vector<8x32xf32>
    %2 = arith.mulf %0, %0 : vector<8x32xf32>
    %cst = arith.constant dense<0.000000e+00> : vector<8xf32>
    %3 = vector.multi_reduction <add>, %2, %cst [1] : vector<8x32xf32> to vector<8xf32>
    %4 = vector.shape_cast %3 : vector<8xf32> to vector<8x1xf32>
    %cst_3 = arith.constant 1.000000e-24 : f32
    %5 = vector.broadcast %cst_3 : f32 to vector<8x1xf32>
    %6 = arith.maximumf %4, %5 : vector<8x1xf32>
    %7 = math.rsqrt %6 : vector<8x1xf32>
    %8 = vector.broadcast %7 : vector<8x1xf32> to vector<8x32xf32>
    %9 = arith.mulf %0, %8 : vector<8x32xf32>
    %10 = arith.mulf %1, %1 : vector<8x32xf32>
    %cst_4 = arith.constant dense<0.000000e+00> : vector<8xf32>
    %11 = vector.multi_reduction <add>, %10, %cst_4 [1] : vector<8x32xf32> to vector<8xf32>
    %12 = vector.shape_cast %11 : vector<8xf32> to vector<8x1xf32>
    %cst_5 = arith.constant 1.000000e-24 : f32
    %13 = vector.broadcast %cst_5 : f32 to vector<8x1xf32>
    %14 = arith.maximumf %12, %13 : vector<8x1xf32>
    %15 = math.rsqrt %14 : vector<8x1xf32>
    %16 = vector.broadcast %15 : vector<8x1xf32> to vector<8x32xf32>
    %17 = arith.mulf %1, %16 : vector<8x32xf32>
    %18 = arith.mulf %9, %17 : vector<8x32xf32>
    %cst_6 = arith.constant dense<0.000000e+00> : vector<8xf32>
    %19 = vector.multi_reduction <add>, %18, %cst_6 [1] : vector<8x32xf32> to vector<8xf32>
    %20 = vector.shape_cast %19 : vector<8xf32> to vector<8x1xf32>
    %cst_7 = arith.constant 0.000000e+00 : f32
    %21 = vector.broadcast %cst_7 : f32 to vector<8x1xf32>
    %c0_8 = arith.constant 0 : index
    %c0_9 = arith.constant 0 : index
    %22 = vector.load %arg2[%c0_8, %c0_9] : memref<8x32xf32, #tpu.memory_space<vmem>>, vector<8x32xf32>
    %23 = arith.mulf %22, %22 : vector<8x32xf32>
    %cst_10 = arith.constant dense<0.000000e+00> : vector<8xf32>
    %24 = vector.multi_reduction <add>, %23, %cst_10 [1] : vector<8x32xf32> to vector<8xf32>
    %25 = vector.shape_cast %24 : vector<8xf32> to vector<8x1xf32>
    %cst_11 = arith.constant 1.000000e-24 : f32
    %26 = vector.broadcast %cst_11 : f32 to vector<8x1xf32>
    %27 = arith.maximumf %25, %26 : vector<8x1xf32>
    %28 = math.rsqrt %27 : vector<8x1xf32>
    %29 = vector.broadcast %28 : vector<8x1xf32> to vector<8x32xf32>
    %30 = arith.mulf %22, %29 : vector<8x32xf32>
    %cst_12 = arith.constant 1.000000e+01 : f32
    %31 = vector.broadcast %cst_12 : f32 to vector<8x32xf32>
    %32 = arith.mulf %9, %31 : vector<8x32xf32>
    %cst_13 = arith.constant dense<0.000000e+00> : vector<8x8xf32>
    %33 = tpu.matmul %32, %30, %cst_13 {dimension_numbers = #tpu.dot_dimension_numbers<[1], [1], [0], [0], [0, 0, 1, 0], [], []>} : vector<8x32xf32>, vector<8x32xf32>, vector<8x8xf32> -> vector<8x8xf32>
    %cst_14 = arith.constant dense<0xFF800000> : vector<8xf32>
    %34 = vector.multi_reduction <maximumf>, %33, %cst_14 [1] : vector<8x8xf32> to vector<8xf32>
    %35 = vector.shape_cast %34 : vector<8xf32> to vector<8x1xf32>
    %36 = vector.broadcast %35 : vector<8x1xf32> to vector<8x8xf32>
    %37 = arith.subf %33, %36 : vector<8x8xf32>
    %38 = math.exp %37 : vector<8x8xf32>
    %cst_15 = arith.constant dense<0.000000e+00> : vector<8xf32>
    %39 = vector.multi_reduction <add>, %38, %cst_15 [1] : vector<8x8xf32> to vector<8xf32>
    %40 = vector.shape_cast %39 : vector<8xf32> to vector<8x1xf32>
    %41 = math.log %40 : vector<8x1xf32>
    %42 = arith.addf %35, %41 : vector<8x1xf32>
    %cst_16 = arith.constant 1.000000e+01 : f32
    %43 = vector.broadcast %cst_16 : f32 to vector<8x1xf32>
    %44 = arith.mulf %20, %43 : vector<8x1xf32>
    %45 = arith.subf %42, %44 : vector<8x1xf32>
    %cst_17 = arith.constant 5.000000e-01 : f32
    %46 = vector.broadcast %cst_17 : f32 to vector<8x1xf32>
    %47 = arith.mulf %46, %45 : vector<8x1xf32>
    %48 = arith.addf %21, %47 : vector<8x1xf32>
    %49 = vector.shape_cast %48 : vector<8x1xf32> to vector<1x8x1xf32>
    %cst_18 = arith.constant dense<0.000000e+00> : vector<1xf32>
    %50 = vector.multi_reduction <add>, %49, %cst_18 [1, 2] : vector<1x8x1xf32> to vector<1xf32>
    %51 = vector.shape_cast %50 : vector<1xf32> to vector<1x1x1xf32>
    %52 = vector.extract %51[0, 0, 0] : f32 from vector<1x1x1xf32>
    %53 = vector.broadcast %52 : f32 to vector<1x8x128xf32>
    %c0_19 = arith.constant 0 : index
    %c0_20 = arith.constant 0 : index
    %c0_21 = arith.constant 0 : index
    %54 = vector.load %arg5[%c0_19, %c0_20, %c0_21] : memref<1x8x128xf32, #tpu.memory_space<vmem>>, vector<1x8x128xf32>
    tpu.vector_store %arg5[%c0_19, %c0_20, %c0_21], %53 {strides = array<i32>} : memref<1x8x128xf32, #tpu.memory_space<vmem>>, vector<1x8x128xf32>,
    return
  }
  func.func @transform_0(%arg0: i32) -> (i32, i32) {
    %c0_i32 = arith.constant 0 : i32
    %c0_i32_0 = arith.constant 0 : i32
    return %arg0, %c0_i32 : i32, i32
  }
  func.func @transform_1(%arg0: i32) -> (i32, i32) {
    %c0_i32 = arith.constant 0 : i32
    %c0_i32_0 = arith.constant 0 : i32
    %c0_i32_1 = arith.constant 0 : i32
    return %c0_i32, %c0_i32_0 : i32, i32
  }
  func.func @transform_2(%arg0: i32) -> (i32, i32) {
    %c0_i32 = arith.constant 0 : i32
    %c0_i32_0 = arith.constant 0 : i32
    return %arg0, %c0_i32 : i32, i32
  }
  func.func @transform_3(%arg0: i32) -> (i32, i32) {
    %c0_i32 = arith.constant 0 : i32
    %c0_i32_0 = arith.constant 0 : i32
    return %arg0, %c0_i32 : i32, i32
  }
  func.func @transform_4(%arg0: i32) -> (i32, i32, i32) {
    %c0_i32 = arith.constant 0 : i32
    %c0_i32_0 = arith.constant 0 : i32
    %c0_i32_1 = arith.constant 0 : i32
    return %arg0, %c0_i32, %c0_i32_0 : i32, i32, i32
  }
}

</mosaic_0001>

<bundles_post_ra>
// kernel: tpu_custom_call.1
= control target key start
LH: loop header
LB: loop body
LE: loop exit
PB: predicated region body
PF: predicated region fallthrough
CT: control target
= control target key end

     0   :  { %9 = vsyncpa [#allocation3], 0  ;;  %s321_s0 = inlined_call_operand.vmem [shape: f32[8,32], index: 0, kind: input, shape index: {}]   ;;  %s322_s1 = inlined_call_operand.hbm [shape: f32[8,32], index: 1, kind: input, shape index: {}]   ;;  %s323_s2 = inlined_call_operand.vmem [shape: f32[8,32], index: 2, kind: input, shape index: {}]   ;;  %s324_s3 = inlined_call_operand.vmem [shape: f32[8,1], index: 3, kind: input, shape index: {}]   ;;  %s325_s4 = inlined_call_operand.hbm [shape: f32[1,8,128], index: 4, kind: output, shape index: {}]  }
   0x1   :  { %10 = vsyncpa [#allocation4], 0  ;;  %s254_s15 = smov [#allocation2]   ;;  %s206_s19 = scalar_lea.hbm %s322_s1, 128 }
   0x2   :  { %s19_s16 = sshll.u32 %s254_s15, 4  ;;  %p207_p0 = scmp.ne.s32.totalorder %s322_s1, %s206_s19  ;;  %s20_s16 = int_to_ptr.vmem [resolvable:$true] %s19_s16 }
   0x3   :  { %p210_p1 = scmp.lt.u32.totalorder %s206_s19, %s322_s1 }
   0x5   :  { %p212_p2 = pnand %p210_p1, %p207_p0 }
   0x7   :  { %215 = shalt.err (!%p212_p2)
}
   0x8   :  { %s216_s3 = scalar_lea.vmem %s20_s16, 128  ;;  %p221_p4 = scmp.lt.s32.totalorder %s20_s16, %s20_s16 }
   0x9   :  { %p217_p3 = scmp.ne.s32.totalorder %s20_s16, %s216_s3  ;;  %p222_p5 = scmp.lt.s32.totalorder %s216_s3, %s216_s3 }
   0xb   :  { %p223_p6 = por %p222_p5, %p221_p4 }
   0xd   :  { %p224_p7 = pnand %p223_p6, %p217_p3 }
   0xf   :  { %227 = shalt.err (!%p224_p7)
}
  0x10   :  { %22 = dma.hbm_to_vmem [thread:$0]  %s322_s1, 128, %s20_s16, [#allocation3]  }
  0x11   :  { %250 = dma.done.wait [#allocation3], 128  }
  0x12   :  { %251 = vsyncadd [#allocation3], 4294967168  ;;  %vm33_vm0 = vcmask 261120   ;;  %v51_v0 = vld [vmem:[#allocation2] sm:$0xff]  ;;  %v255_v6 = vmov 0.0   ;;  %vm256_vm1 = vmmov 0  }
  0x13   :  { %v30_v1 = vld [vmem:[%s321_s0] sm:$0xff]  ;;  %v52_v2 = vmul.f32 %v51_v0, %v51_v0  ;;  %185 = vmatprep.subr.mxu0 %v255_v6  ;;  %187 = vmatprep.mubr.msk.f32.mxu0 %vm256_vm1, %v255_v6  ;;  %vm136_vm2 = vcmask 64512   ;;  %vm153_vm3 = vcmask 7168  }
  0x14   :  { %v32_v3 = vmul.f32 %v30_v1, %v30_v1  ;;  %v31_v16 = vld [vmem:[%s323_s2] sm:$0xff]  ;;  %s257_s2 = smov [#allocation5]  }
  0x15   :  { %v53_v4 = vsel %vm33_vm0, %v52_v2, 0.0  ;;  %v40_v17 = vmul.f32 %v31_v16, %v31_v16  ;;  %s172_s28 = sshll.u32 %s257_s2, 4  ;;  %s173_s28 = int_to_ptr.vmem [resolvable:$true] %s172_s28 }
  0x16   :  { %54 = vadd.xlane.f32.xlu0 %v53_v4  ;;  %v34_v5 = vsel %vm33_vm0, %v32_v3, 0.0  ;;  %s228_s30 = scalar_lea.vmem %s173_s28, 128  ;;  %p233_p9 = scmp.lt.s32.totalorder %s173_s28, %s173_s28 }
  0x17   :  { %v41_v21 = vsel %vm33_vm0, %v40_v17, 0.0  ;;  %p229_p8 = scmp.ne.s32.totalorder %s173_s28, %s228_s30  ;;  %p234_p10 = scmp.lt.s32.totalorder %s228_s30, %s228_s30 }
  0x19   :  { %p235_p11 = por %p234_p10, %p233_p9 }
  0x1a   :  { %35 = vadd.xlane.f32.xlu0 %v34_v5 }
  0x1b   :  { %p236_p12 = pnand %p235_p11, %p229_p8 }
  0xa3   :  { %v55_v7 = vpop.xlane.xlu0 %54 }
  0xa4   :  { %v56_v8 = vmax.f32 %v55_v7, 1e-24 }
  0xa6   :  { %196 = vrsqrt.f32 %v56_v8 }
  0xa7   :  { %v36_v9 = vpop.xlane.xlu0 %35 }
  0xa8   :  { %v37_v10 = vmax.f32 %v36_v9, 1e-24 }
  0xaa   :  { %198 = vrsqrt.f32 %v37_v10 }
  0xb0   :  { %v197_v11 = vpop.eup %196 }
  0xb1   :  { %v58_v12 = vmul.f32 %v197_v11, %v51_v0 }
  0xb3   :  { %186 = vmatpush3.xpose.msk.msra.mxu0 %vm33_vm0, %v58_v12 }
  0xb4   :  { %v199_v13 = vpop.eup %198 }
  0xb5   :  { %v39_v14 = vmul.f32 %v199_v13, %v30_v1 }
  0xb7   :  { %v59_v15 = vmul.f32 10.0, %v39_v14 }
  0xb9   :  { %188 = vmatmul.mubr.msk.f32.vlgmr.msra.gmra.mrb[0].mxu0 %vm33_vm0, %v59_v15 }
 0x18c   :  { %v132_v18 = vpop.f32.mrb[0].mxu0 }
 0x18d   :  { %v189_v19 = vpop.f32.mrb[1].mxu0  ;;  %v137_v20 = vsel %vm136_vm2, %v132_v18, -inf }
 0x18e   :  { %138 = vmax.xlane.f32.xlu1 %v137_v20 }
 0x192   :  { %42 = vadd.xlane.f32.xlu1 %v41_v21 }
 0x21b   :  { %v139_v22 = vpop.xlane.xlu1 %138 }
 0x21c   :  { %v140_v23 = vsub.f32 %v132_v18, %v139_v22 }
 0x21e   :  { %v141_v24 = vmul.f32 1.442695, %v140_v23 }
 0x21f   :  { %v43_v25 = vpop.xlane.xlu1 %42 }
 0x220   :  { %200 = vpow2.f32 %v141_v24  ;;  %v44_v26 = vmax.f32 %v43_v25, 1e-24 }
 0x222   :  { %202 = vrsqrt.f32 %v44_v26 }
 0x22a   :  { %v201_v27 = vpop.eup %200 }
 0x22b   :  { %v143_v28 = vsel %vm136_vm2, %v201_v27, 0.0 }
 0x22c   :  { %v203_v29 = vpop.eup %202  ;;  %144 = vadd.xlane.f32.xlu0 %v143_v28 }
 0x22d   :  { %v46_v30 = vmul.f32 %v203_v29, %v31_v16 }
 0x22f   :  { %v47_v31 = vmul.f32 %v46_v30, %v39_v14 }
 0x231   :  { %v48_v32 = vsel %vm33_vm0, %v47_v31, 0.0 }
 0x232   :  { %49 = vadd.xlane.f32.xlu1 %v48_v32 }
 0x2b9   :  { %v145_v33 = vpop.xlane.xlu0 %144 }
 0x2ba   :  { %204 = vlog2.f32 %v145_v33 }
 0x2bf   :  { %v50_v35 = vpop.xlane.xlu1 %49 }
 0x2c0   :  { %v149_v38 = vmul.f32 10.0, %v50_v35 }
 0x2c4   :  { %v205_v34 = vpop.eup %204 }
 0x2c5   :  { %v147_v36 = vmul.f32 0.6931472, %v205_v34 }
 0x2c7   :  { %v148_v37 = vadd.f32 %v147_v36, %v139_v22 }
 0x2c9   :  { %v150_v39 = vsub.f32 %v148_v37, %v149_v38 }
 0x2cb   :  { %v151_v40 = vmul.f32 0.5, %v150_v39 }
 0x2cd   :  { %v154_v41 = vsel %vm153_vm3, %v151_v40, 0.0 }
 0x2ce   :  { %155 = vadd.xlane.f32.xlu0 %v154_v41 }
 0x35b   :  { %v156_v42 = vpop.xlane.xlu0 %155 }
 0x35c   :  { %v157_v43 = vrot.slane %v156_v42, 4 }
 0x35e   :  { %v158_v44 = vadd.f32 %v157_v43, %v156_v42 }
 0x360   :  { %v159_v45 = vrot.slane %v158_v44, 2 }
 0x362   :  { %v160_v46 = vadd.f32 %v159_v45, %v158_v44 }
 0x364   :  { %v161_v47 = vrot.slane %v160_v46, 1 }
 0x366   :  { %v162_v48 = vadd.f32 %v161_v47, %v160_v46 }
 0x368   :  { %190 = vpush %v162_v48 }
 0x399   :  { %s191_s29 = spop %190 }
 0x39a   :  { %v164_v49 = vstv %s191_s29 }
 0x39b   :  { %165 = vst [vmem:[#allocation5] sm:$0xff] %v164_v49 }
 0x39c   :  { %239 = shalt.err (!%p236_p12)
}
 0x39d   :  { %s240_s7 = scalar_lea.hbm %s325_s4, 128 }
 0x39e   :  { %p241_p13 = scmp.ne.s32.totalorder %s325_s4, %s240_s7  ;;  %p244_p0 = scmp.lt.u32.totalorder %s240_s7, %s325_s4 }
 0x3a0   :  { %p246_p1 = pnand %p244_p0, %p241_p13 }
 0x3a2   :  { %249 = shalt.err (!%p246_p1)
}
 0x3a3   :  { %175 = dma.vmem_to_hbm [thread:$0]  %s173_s28, 128, %s325_s4, [#allocation4]  }
 0x3a4   :  { %252 = dma.done.wait [#allocation4], 128  }
 0x3a5   :  { %253 = vsyncadd [#allocation4], 4294967168 }
 0x3a6   :  { %179 = vsyncpa [#allocation3], 1 }
 0x3a7   :  { %180 = vsyncpa [#allocation4], 1 }

</bundles_post_ra>
